<compile_context>
chip_gen: v7x
topology: tpu7x:2x2x1
jax: 0.10.0
libtpu: 0.0.40
codegen_flags: <defaults>
</compile_context>

<pallas_src>
import functools

import jax
import jax.numpy as jnp
from jax.experimental import pallas as pl
from jax.experimental.pallas import tpu as pltpu

_LANES = 128
_SLAB_COLS = 4 * _LANES                  # lane-dense rows: 512 lanes
_TARGET_BLOCK_BYTES = 4 * 1024 * 1024    # ~4 MiB/block -> 4 bufs ~= 16 MiB VMEM
_VMEM_LIMIT_BYTES = 64 * 1024 * 1024     # explicit scoped limit (fits v7x)


def _round_up(x: int, m: int) -> int:
    return ((x + m - 1) // m) * m


def _cdiv(a: int, b: int) -> int:
    return -(-a // b)


def _copy_kernel(x_ref, o_ref):
    # Trivial elementwise pass-through (the base class defines no compute).
    o_ref[...] = x_ref[...]


@functools.partial(jax.jit, static_argnames=())
def identity_passthrough(x: jax.Array) -> jax.Array:
    """No-op Pallas kernel: copies `x` through VMEM in large lane-dense tiles."""
    orig_shape = x.shape
    orig_dtype = x.dtype
    n = int(x.size)
    itemsize = jnp.dtype(orig_dtype).itemsize

    # Sublane packing: f32 -> 8 rows/vreg, bf16 -> 16, int8 -> 32.
    pack = max(8, 32 // itemsize)

    cols = _SLAB_COLS
    rows_needed = max(1, _cdiv(n, cols))

    # Biggest tile that keeps the double-buffered footprint (2 input bufs +
    # 2 output bufs = 4 * block bytes) comfortably inside VMEM on every
    # generation, rounded to the dtype's sublane packing.
    tile_rows = max(pack, _round_up(_TARGET_BLOCK_BYTES // (cols * itemsize), pack))
    if rows_needed > pack:
        # Keep >= 2 grid steps so the "parallel" row axis can shard across
        # both TensorCores on v7x (no-op on v5e/v6e).
        tile_rows = min(tile_rows, _round_up(_cdiv(rows_needed, 2), pack))
    tile_rows = min(tile_rows, _round_up(rows_needed, pack))

    padded_rows = _round_up(rows_needed, tile_rows)
    padded_n = padded_rows * cols

    flat = x.reshape(-1)
    if padded_n != n:
        flat = jnp.pad(flat, (0, padded_n - n))
    slab = flat.reshape(padded_rows, cols)

    grid = (padded_rows // tile_rows,)
    out = pl.pallas_call(
        _copy_kernel,
        out_shape=jax.ShapeDtypeStruct((padded_rows, cols), orig_dtype),
        grid=grid,
        in_specs=[pl.BlockSpec((tile_rows, cols), lambda i: (i, 0))],
        out_specs=pl.BlockSpec((tile_rows, cols), lambda i: (i, 0)),
        input_output_aliases={0: 0},
        compiler_params=pltpu.CompilerParams(
            dimension_semantics=("parallel",),
            vmem_limit_bytes=_VMEM_LIMIT_BYTES,
        ),
    )(slab)

    return out.reshape(-1)[:n].reshape(orig_shape)


class Optimizer:
    """JAX/Pallas mirror of the abstract PyTorch `Optimizer` base module."""

    def __init__(self, *args, **kwargs):
        # The reference __init__ registers no parameters; nothing to init.
        pass

    def forward(self):
        # Faithful to the reference module: abstract forward.
        raise NotImplementedError


if __name__ == "__main__":
    key = jax.random.PRNGKey(0)

    # Confirm the abstract contract is preserved.
    opt = Optimizer()
    try:
        opt.forward()
        raise AssertionError("base Optimizer.forward() should be abstract")
    except NotImplementedError:
        pass

    # Exercise the (no-op) Pallas kernel on TPU with a small aligned input.
    x = jax.random.normal(key, (8, 128), dtype=jnp.float32)
    y = identity_passthrough(x)
    jax.block_until_ready(y)
    assert y.shape == x.shape and y.dtype == x.dtype
    assert bool(jnp.array_equal(y, x))

    # Ragged / non-lane-aligned shape exercises the pad-and-slab path.
    x2 = jax.random.normal(jax.random.PRNGKey(0), (5, 37), dtype=jnp.float32)
    y2 = identity_passthrough(x2)
    jax.block_until_ready(y2)
    assert y2.shape == x2.shape and y2.dtype == x2.dtype
    assert bool(jnp.array_equal(y2, x2))

    # Sub-32-bit dtype exercises the sublane-packing branch (16 rows/vreg).
    x3 = jax.random.normal(jax.random.PRNGKey(0), (4, 8, 32)).astype(jnp.bfloat16)
    y3 = identity_passthrough(x3)
    jax.block_until_ready(y3)
    assert y3.shape == x3.shape and y3.dtype == x3.dtype
    assert bool(jnp.array_equal(y3, x3))

    print("KERNEL_OK")
</pallas_src>

<mosaic_0001>
module attributes {stable_mosaic.version = 11 : i64} {
  func.func @_copy_kernel(%arg0: i32, %arg1: memref<8x512xf32, #tpu.memory_space<vmem>>, %arg2: memref<8x512xf32, #tpu.memory_space<vmem>>) attributes {dimension_semantics = [#tpu.dimension_semantics<parallel>], iteration_bounds = array<i64: 1>, scalar_prefetch = 0 : i64, scratch_operands = 0 : i64, tpu.core_type = #tpu.core_type<tc>, window_params = [{transform_indices = @transform_0, window_bounds = array<i64: 8, 512>}, {transform_indices = @transform_1, window_bounds = array<i64: 8, 512>}]} {
    %c0 = arith.constant 0 : index
    %c0_0 = arith.constant 0 : index
    %0 = vector.load %arg1[%c0, %c0_0] : memref<8x512xf32, #tpu.memory_space<vmem>>, vector<8x512xf32>
    %c0_1 = arith.constant 0 : index
    %c0_2 = arith.constant 0 : index
    %1 = vector.load %arg2[%c0_1, %c0_2] : memref<8x512xf32, #tpu.memory_space<vmem>>, vector<8x512xf32>
    tpu.vector_store %arg2[%c0_1, %c0_2], %0 {strides = array<i32>} : memref<8x512xf32, #tpu.memory_space<vmem>>, vector<8x512xf32>,
    return
  }
  func.func @transform_0(%arg0: i32) -> (i32, i32) {
    %c0_i32 = arith.constant 0 : i32
    %c0_i32_0 = arith.constant 0 : i32
    return %arg0, %c0_i32 : i32, i32
  }
  func.func @transform_1(%arg0: i32) -> (i32, i32) {
    %c0_i32 = arith.constant 0 : i32
    %c0_i32_0 = arith.constant 0 : i32
    return %arg0, %c0_i32 : i32, i32
  }
}

</mosaic_0001>

<bundles_post_ra>
// kernel: identity_passthrough.1
= control target key start
LH: loop header
LB: loop body
LE: loop exit
PB: predicated region body
PF: predicated region fallthrough
CT: control target
= control target key end

     0   :  { %6 = vsyncpa [#allocation3], 0  ;;  %s130_s0 = inlined_call_operand.hbm [shape: f32[8,512], index: 0, kind: input, shape index: {}, may-alias: {0,1}]   ;;  %s131_s1 = inlined_call_operand.hbm [shape: f32[8,512], index: 1, kind: output, shape index: {}, may-alias: {0,1}]  }
   0x1   :  { %7 = vsyncpa [#allocation4], 0  ;;  %s94_s6 = smov [#allocation2]   ;;  %s46_s10 = scalar_lea.hbm %s130_s0, 512 }
   0x2   :  { %s14_s7 = sshll.u32 %s94_s6, 4  ;;  %p47_p0 = scmp.ne.s32.totalorder %s130_s0, %s46_s10  ;;  %s15_s7 = int_to_ptr.vmem [resolvable:$true] %s14_s7 }
   0x3   :  { %p50_p1 = scmp.lt.u32.totalorder %s46_s10, %s130_s0 }
   0x5   :  { %p52_p2 = pnand %p50_p1, %p47_p0 }
   0x7   :  { %55 = shalt.err (!%p52_p2)
}
   0x8   :  { %s56_s15 = scalar_lea.vmem %s15_s7, 512  ;;  %p61_p4 = scmp.lt.s32.totalorder %s15_s7, %s15_s7 }
   0x9   :  { %p57_p3 = scmp.ne.s32.totalorder %s15_s7, %s56_s15  ;;  %p62_p5 = scmp.lt.s32.totalorder %s56_s15, %s56_s15 }
   0xb   :  { %p63_p6 = por %p62_p5, %p61_p4 }
   0xd   :  { %p64_p7 = pnand %p63_p6, %p57_p3 }
   0xf   :  { %67 = shalt.err (!%p64_p7)
}
  0x10   :  { %17 = dma.hbm_to_vmem [thread:$0]  %s130_s0, 512, %s15_s7, [#allocation3]  }
  0x11   :  { %90 = dma.done.wait [#allocation3], 512  }
  0x12   :  { %91 = vsyncadd [#allocation3], 4294966784  ;;  %s95_s18 = smov [#allocation5]   ;;  %v21_v0 = vld [vmem:[#allocation2] sm:$0xff]  ;;  %v22_v1 = vld [vmem:[#allocation2 + $0x8] sm:$0xff] }
  0x13   :  { %s35_s19 = sshll.u32 %s95_s18, 4  ;;  %v23_v2 = vld [vmem:[#allocation2 + $0x10] sm:$0xff]  ;;  %25 = vst [vmem:[#allocation5] sm:$0xff] %v21_v0  ;;  %26 = vst [vmem:[#allocation5 + $0x8] sm:$0xff] %v22_v1  ;;  %v24_v3 = vld [vmem:[#allocation2 + $0x18] sm:$0xff]  ;;  %s36_s19 = int_to_ptr.vmem [resolvable:$true] %s35_s19 }
  0x14   :  { %27 = vst [vmem:[#allocation5 + $0x10] sm:$0xff] %v23_v2  ;;  %28 = vst [vmem:[#allocation5 + $0x18] sm:$0xff] %v24_v3  ;;  %s68_s20 = scalar_lea.vmem %s36_s19, 512  ;;  %p73_p9 = scmp.lt.s32.totalorder %s36_s19, %s36_s19 }
  0x15   :  { %p69_p8 = scmp.ne.s32.totalorder %s36_s19, %s68_s20  ;;  %p74_p10 = scmp.lt.s32.totalorder %s68_s20, %s68_s20 }
  0x17   :  { %p75_p11 = por %p74_p10, %p73_p9 }
  0x19   :  { %p76_p12 = pnand %p75_p11, %p69_p8 }
  0x1b   :  { %79 = shalt.err (!%p76_p12)
}
  0x1c   :  { %s80_s22 = scalar_lea.hbm %s131_s1, 512 }
  0x1d   :  { %p81_p13 = scmp.ne.s32.totalorder %s131_s1, %s80_s22  ;;  %p84_p0 = scmp.lt.u32.totalorder %s80_s22, %s131_s1 }
  0x1f   :  { %p86_p1 = pnand %p84_p0, %p81_p13 }
  0x21   :  { %89 = shalt.err (!%p86_p1)
}
  0x22   :  { %38 = dma.vmem_to_hbm [thread:$0]  %s36_s19, 512, %s131_s1, [#allocation4]  }
  0x23   :  { %92 = dma.done.wait [#allocation4], 512  }
  0x24   :  { %93 = vsyncadd [#allocation4], 4294966784 }
  0x25   :  { %42 = vsyncpa [#allocation3], 1 }
  0x26   :  { %43 = vsyncpa [#allocation4], 1 }

</bundles_post_ra>
